<compile_context>
chip_gen: v7x
topology: tpu7x:2x2x1
jax: 0.10.0
libtpu: 0.0.40
codegen_flags: <defaults>
</compile_context>

<pallas_src>
import jax
import jax.numpy as jnp
from jax import lax
from jax.experimental import pallas as pl
from jax.experimental.pallas import tpu as pltpu

LANE = 128
SUBLANE = 8


def _round_up(a, b):
    return ((a + b - 1) // b) * b


def _make_dice_kernel(C, row_tile, hw, needs_mask):
    def kernel(x_ref, t_ref, out_ref):
        # x_ref:   (C, row_tile, 128)  logits tile (native dtype), channel leading
        # t_ref:   (row_tile, 128)     target tile (channel 0 of target)
        # out_ref: (3, 8, 128) f32 per-tile partials [intersect, sum_pred, sum_gt]

        # Cast each channel slab exactly once; reused by both the max and exp passes.
        xs = [x_ref[c].astype(jnp.float32) for c in range(C)]
        t = t_ref[...].astype(jnp.float32)

        # Channel-wise max as an unrolled elementwise maximum (pure VPU).
        m = xs[0]
        for c in range(1, C):
            m = jnp.maximum(m, xs[c])

        # Softmax denominator + channel-1 numerator (EUP exp, VPU adds).
        denom = jnp.exp(xs[0] - m)
        e1 = None
        for c in range(1, C):
            ec = jnp.exp(xs[c] - m)
            if c == 1:
                e1 = ec
            denom = denom + ec

        p = e1 / denom                      # (row_tile, 128) probability of class 1

        if needs_mask:
            # Ragged tail (hw not a multiple of the tile coverage): mask by the global
            # flattened element index within the image.  A couple of free VPU ops.
            r = pl.program_id(1)
            remaining = hw - r * (row_tile * LANE)            # scalar int32
            row_ids = lax.broadcasted_iota(jnp.int32, (row_tile, LANE), 0)
            lane_ids = lax.broadcasted_iota(jnp.int32, (row_tile, LANE), 1)
            mask = (row_ids * LANE + lane_ids) < remaining
            p = jnp.where(mask, p, 0.0)
            t = jnp.where(mask, t, 0.0)

        inter = p * t

        # Group-reduce (row_tile, 128) -> (8, 128): the reshape regroups consecutive
        # sublane octets (native tiling, free) and the axis-0 sum is plain vreg adds.
        def grp(v):
            return jnp.sum(v.reshape(row_tile // SUBLANE, SUBLANE, LANE), axis=0)

        out_ref[0] = grp(inter)
        out_ref[1] = grp(p)
        out_ref[2] = grp(t)

    return kernel


def dice_loss(input_nchw, target_nchw, *, row_tile_max=2048,
              vmem_limit_bytes=48 * 1024 * 1024, use_core_parallel=False):
    N, C, H, W = input_nchw.shape
    assert C >= 2, "channel-1 dice requires C >= 2"
    assert target_nchw.ndim == 4 and target_nchw.shape[0] == N \
        and target_nchw.shape[2:] == (H, W), "target must be (N, Ct, H, W)"
    Ct = target_nchw.shape[1]

    hw = H * W
    # Lane-dense layout with NO transpose: (N, C, H, W) -> (N, C, rows, 128) is a free
    # reshape whenever H*W is a multiple of 128.  Only tiny / unaligned shapes pay a pad.
    x = input_nchw.reshape(N, C, hw)
    t = target_nchw.reshape(N, Ct, hw)

    rows = _round_up(hw, LANE) // LANE
    rows_arr = _round_up(rows, SUBLANE)               # keep blocks inside array bounds
    flat_pad = rows_arr * LANE
    if flat_pad != hw:
        x = jnp.pad(x, ((0, 0), (0, 0), (0, flat_pad - hw)))
        t = jnp.pad(t, ((0, 0), (0, 0), (0, flat_pad - hw)))
    x = x.reshape(N, C, rows_arr, LANE)
    t = t.reshape(N, Ct, rows_arr, LANE)

    # row_tile from a VMEM budget: double-buffered inputs + f32 temporaries
    # (C hoisted channel casts + m/denom/e1/p/t/inter), leaving headroom for Mosaic.
    itemsize_x = x.dtype.itemsize
    itemsize_t = t.dtype.itemsize
    bytes_per_row = LANE * (2 * (C * itemsize_x + itemsize_t) + 4 * (C + 6))
    budget = (vmem_limit_bytes * 2) // 3
    row_tile = min(row_tile_max, budget // bytes_per_row, rows_arr)
    row_tile = max(SUBLANE, (row_tile // SUBLANE) * SUBLANE)
    num_tiles = pl.cdiv(rows_arr, row_tile)

    # Mask needed whenever the per-image tile coverage exceeds the real H*W elements
    # (pad rows, partial last tile, or unaligned H*W).
    needs_mask = (num_tiles * row_tile * LANE != hw)

    kernel = _make_dice_kernel(C, row_tile, hw, needs_mask)

    cost = pl.CostEstimate(
        flops=int(6 * N * hw * C),
        transcendentals=int(N * hw * C),
        bytes_accessed=int(x.size * itemsize_x
                           + N * rows_arr * LANE * itemsize_t
                           + N * num_tiles * 3 * SUBLANE * LANE * 4),
    )

    # Both grid axes write disjoint output blocks -> fully parallel.  On v7x, sharding the
    # row-tile axis across the two TensorCores needs CORE_PARALLEL (plain "parallel" is a
    # near no-op); keep it opt-in so single-core v5e/v6e stay on the default path.
    if use_core_parallel:
        semantics = (pltpu.PARALLEL, pltpu.CORE_PARALLEL)
    else:
        semantics = ("parallel", "parallel")

    partials = pl.pallas_call(
        kernel,
        out_shape=jax.ShapeDtypeStruct((N, num_tiles, 3, SUBLANE, LANE), jnp.float32),
        grid_spec=pltpu.PrefetchScalarGridSpec(
            num_scalar_prefetch=0,
            grid=(N, num_tiles),
            in_specs=[
                # logits: all channels of image n, row tile r (per-channel strided DMA)
                pl.BlockSpec((None, C, row_tile, LANE), lambda n, r: (n, 0, r, 0)),
                # target: channel 0 only of image n, row tile r
                pl.BlockSpec((None, None, row_tile, LANE), lambda n, r: (n, 0, r, 0)),
            ],
            out_specs=pl.BlockSpec((None, None, 3, SUBLANE, LANE),
                                   lambda n, r: (n, r, 0, 0, 0)),
        ),
        compiler_params=pltpu.CompilerParams(
            dimension_semantics=semantics,
            vmem_limit_bytes=vmem_limit_bytes),
        cost_estimate=cost,
    )(x, t)

    # Final scalar combine in plain JAX (tiny array).
    sums = jnp.sum(partials, axis=(0, 1, 3, 4))       # [intersect, sum_pred, sum_gt]
    intersect, sum_pred, sum_gt = sums[0], sums[1], sums[2]
    smooth = 1e-05
    dice = (2.0 * intersect + smooth) / (sum_pred + sum_gt + smooth)
    return 1.0 - dice


def dice_loss_ref(input_nchw, target_nchw):
    # pure-JAX reference mirroring the PyTorch module exactly
    p = jax.nn.softmax(input_nchw, axis=1)[:, 1, :]
    t = target_nchw[:, 0, :]
    smooth = 1e-05
    intersect = jnp.sum(p * t)
    sum_gt = jnp.sum(t)
    sum_pred = jnp.sum(p)
    dice = (2.0 * intersect + smooth) / (sum_pred + sum_gt + smooth)
    return 1.0 - dice


if __name__ == "__main__":
    key = jax.random.PRNGKey(0)
    k1, k2 = jax.random.split(key)
    N, C, H, W = 2, 4, 16, 16
    logits = jax.random.normal(k1, (N, C, H, W), dtype=jnp.float32)
    target = jax.random.bernoulli(k2, p=0.3, shape=(N, 1, H, W)).astype(jnp.float32)

    loss = jax.block_until_ready(dice_loss(logits, target))
    ref = jax.block_until_ready(dice_loss_ref(logits, target))
    assert jnp.allclose(loss, ref, rtol=1e-5, atol=1e-6), (loss, ref)
    print("KERNEL_OK")
</pallas_src>

<mosaic_0001>
module attributes {stable_mosaic.version = 11 : i64} {
  func.func @kernel(%arg0: i32, %arg1: i32, %arg2: memref<1x4x8x128xf32, #tpu.memory_space<vmem>>, %arg3: memref<1x1x8x128xf32, #tpu.memory_space<vmem>>, %arg4: memref<1x1x3x8x128xf32, #tpu.memory_space<vmem>>) attributes {dimension_semantics = [#tpu.dimension_semantics<parallel>, #tpu.dimension_semantics<parallel>], iteration_bounds = array<i64: 2, 1>, scalar_prefetch = 0 : i64, scratch_operands = 0 : i64, tpu.core_type = #tpu.core_type<tc>, window_params = [{transform_indices = @transform_0, window_bounds = array<i64: 1, 4, 8, 128>}, {transform_indices = @transform_1, window_bounds = array<i64: 1, 1, 8, 128>}, {transform_indices = @transform_2, window_bounds = array<i64: 1, 1, 3, 8, 128>}]} {
    %c0 = arith.constant 0 : index
    %c0_0 = arith.constant 0 : index
    %c0_1 = arith.constant 0 : index
    %c0_2 = arith.constant 0 : index
    %0 = vector.load %arg2[%c0, %c0_0, %c0_1, %c0_2] : memref<1x4x8x128xf32, #tpu.memory_space<vmem>>, vector<1x1x8x128xf32>
    %1 = vector.shape_cast %0 : vector<1x1x8x128xf32> to vector<8x128xf32>
    %c0_3 = arith.constant 0 : index
    %c1 = arith.constant 1 : index
    %c0_4 = arith.constant 0 : index
    %c0_5 = arith.constant 0 : index
    %2 = vector.load %arg2[%c0_3, %c1, %c0_4, %c0_5] : memref<1x4x8x128xf32, #tpu.memory_space<vmem>>, vector<1x1x8x128xf32>
    %3 = vector.shape_cast %2 : vector<1x1x8x128xf32> to vector<8x128xf32>
    %c0_6 = arith.constant 0 : index
    %c2 = arith.constant 2 : index
    %c0_7 = arith.constant 0 : index
    %c0_8 = arith.constant 0 : index
    %4 = vector.load %arg2[%c0_6, %c2, %c0_7, %c0_8] : memref<1x4x8x128xf32, #tpu.memory_space<vmem>>, vector<1x1x8x128xf32>
    %5 = vector.shape_cast %4 : vector<1x1x8x128xf32> to vector<8x128xf32>
    %c0_9 = arith.constant 0 : index
    %c3 = arith.constant 3 : index
    %c0_10 = arith.constant 0 : index
    %c0_11 = arith.constant 0 : index
    %6 = vector.load %arg2[%c0_9, %c3, %c0_10, %c0_11] : memref<1x4x8x128xf32, #tpu.memory_space<vmem>>, vector<1x1x8x128xf32>
    %7 = vector.shape_cast %6 : vector<1x1x8x128xf32> to vector<8x128xf32>
    %c0_12 = arith.constant 0 : index
    %c0_13 = arith.constant 0 : index
    %c0_14 = arith.constant 0 : index
    %c0_15 = arith.constant 0 : index
    %8 = vector.load %arg3[%c0_12, %c0_13, %c0_14, %c0_15] : memref<1x1x8x128xf32, #tpu.memory_space<vmem>>, vector<1x1x8x128xf32>
    %9 = vector.shape_cast %8 : vector<1x1x8x128xf32> to vector<8x128xf32>
    %10 = arith.maximumf %1, %3 : vector<8x128xf32>
    %11 = arith.maximumf %10, %5 : vector<8x128xf32>
    %12 = arith.maximumf %11, %7 : vector<8x128xf32>
    %13 = arith.subf %1, %12 : vector<8x128xf32>
    %14 = math.exp %13 : vector<8x128xf32>
    %15 = arith.subf %3, %12 : vector<8x128xf32>
    %16 = math.exp %15 : vector<8x128xf32>
    %17 = arith.addf %14, %16 : vector<8x128xf32>
    %18 = arith.subf %5, %12 : vector<8x128xf32>
    %19 = math.exp %18 : vector<8x128xf32>
    %20 = arith.addf %17, %19 : vector<8x128xf32>
    %21 = arith.subf %7, %12 : vector<8x128xf32>
    %22 = math.exp %21 : vector<8x128xf32>
    %23 = arith.addf %20, %22 : vector<8x128xf32>
    %24 = arith.divf %16, %23 : vector<8x128xf32>
    %c1024_i32 = arith.constant 1024 : i32
    %25 = arith.muli %arg1, %c1024_i32 : i32
    %c256_i32 = arith.constant 256 : i32
    %26 = arith.subi %c256_i32, %25 : i32
    %27 = tpu.iota {dimensions = array<i32: 0>} : vector<8x128xi32>
    %28 = tpu.iota {dimensions = array<i32: 1>} : vector<8x128xi32>
    %c128_i32 = arith.constant 128 : i32
    %29 = vector.broadcast %c128_i32 : i32 to vector<8x128xi32>
    %30 = arith.muli %27, %29 : vector<8x128xi32>
    %31 = arith.addi %30, %28 : vector<8x128xi32>
    %32 = vector.broadcast %26 : i32 to vector<8x128xi32>
    %33 = arith.cmpi slt, %31, %32 : vector<8x128xi32>
    %cst = arith.constant 0.000000e+00 : f32
    %34 = vector.broadcast %cst : f32 to vector<8x128xf32>
    %35 = arith.select %33, %24, %34 : vector<8x128xi1>, vector<8x128xf32>
    %cst_16 = arith.constant 0.000000e+00 : f32
    %36 = vector.broadcast %cst_16 : f32 to vector<8x128xf32>
    %37 = arith.select %33, %9, %36 : vector<8x128xi1>, vector<8x128xf32>
    %38 = arith.mulf %35, %37 : vector<8x128xf32>
    %39 = vector.shape_cast %38 : vector<8x128xf32> to vector<1x8x128xf32>
    %cst_17 = arith.constant dense<0.000000e+00> : vector<8x128xf32>
    %40 = vector.multi_reduction <add>, %39, %cst_17 [0] : vector<1x8x128xf32> to vector<8x128xf32>
    %c0_18 = arith.constant 0 : index
    %c0_19 = arith.constant 0 : index
    %c0_20 = arith.constant 0 : index
    %c0_21 = arith.constant 0 : index
    %c0_22 = arith.constant 0 : index
    %41 = vector.load %arg4[%c0_18, %c0_19, %c0_20, %c0_21, %c0_22] : memref<1x1x3x8x128xf32, #tpu.memory_space<vmem>>, vector<1x1x1x8x128xf32>
    %42 = vector.shape_cast %41 : vector<1x1x1x8x128xf32> to vector<8x128xf32>
    %43 = vector.shape_cast %40 : vector<8x128xf32> to vector<1x1x1x8x128xf32>
    tpu.vector_store %arg4[%c0_18, %c0_19, %c0_20, %c0_21, %c0_22], %43 {strides = array<i32>} : memref<1x1x3x8x128xf32, #tpu.memory_space<vmem>>, vector<1x1x1x8x128xf32>,
    %44 = vector.shape_cast %35 : vector<8x128xf32> to vector<1x8x128xf32>
    %cst_23 = arith.constant dense<0.000000e+00> : vector<8x128xf32>
    %45 = vector.multi_reduction <add>, %44, %cst_23 [0] : vector<1x8x128xf32> to vector<8x128xf32>
    %c0_24 = arith.constant 0 : index
    %c0_25 = arith.constant 0 : index
    %c1_26 = arith.constant 1 : index
    %c0_27 = arith.constant 0 : index
    %c0_28 = arith.constant 0 : index
    %46 = vector.load %arg4[%c0_24, %c0_25, %c1_26, %c0_27, %c0_28] : memref<1x1x3x8x128xf32, #tpu.memory_space<vmem>>, vector<1x1x1x8x128xf32>
    %47 = vector.shape_cast %46 : vector<1x1x1x8x128xf32> to vector<8x128xf32>
    %48 = vector.shape_cast %45 : vector<8x128xf32> to vector<1x1x1x8x128xf32>
    tpu.vector_store %arg4[%c0_24, %c0_25, %c1_26, %c0_27, %c0_28], %48 {strides = array<i32>} : memref<1x1x3x8x128xf32, #tpu.memory_space<vmem>>, vector<1x1x1x8x128xf32>,
    %49 = vector.shape_cast %37 : vector<8x128xf32> to vector<1x8x128xf32>
    %cst_29 = arith.constant dense<0.000000e+00> : vector<8x128xf32>
    %50 = vector.multi_reduction <add>, %49, %cst_29 [0] : vector<1x8x128xf32> to vector<8x128xf32>
    %c0_30 = arith.constant 0 : index
    %c0_31 = arith.constant 0 : index
    %c2_32 = arith.constant 2 : index
    %c0_33 = arith.constant 0 : index
    %c0_34 = arith.constant 0 : index
    %51 = vector.load %arg4[%c0_30, %c0_31, %c2_32, %c0_33, %c0_34] : memref<1x1x3x8x128xf32, #tpu.memory_space<vmem>>, vector<1x1x1x8x128xf32>
    %52 = vector.shape_cast %51 : vector<1x1x1x8x128xf32> to vector<8x128xf32>
    %53 = vector.shape_cast %50 : vector<8x128xf32> to vector<1x1x1x8x128xf32>
    tpu.vector_store %arg4[%c0_30, %c0_31, %c2_32, %c0_33, %c0_34], %53 {strides = array<i32>} : memref<1x1x3x8x128xf32, #tpu.memory_space<vmem>>, vector<1x1x1x8x128xf32>,
    return
  }
  func.func @transform_0(%arg0: i32, %arg1: i32) -> (i32, i32, i32, i32) {
    %c0_i32 = arith.constant 0 : i32
    %c0_i32_0 = arith.constant 0 : i32
    %c0_i32_1 = arith.constant 0 : i32
    return %arg0, %c0_i32, %arg1, %c0_i32_0 : i32, i32, i32, i32
  }
  func.func @transform_1(%arg0: i32, %arg1: i32) -> (i32, i32, i32, i32) {
    %c0_i32 = arith.constant 0 : i32
    %c0_i32_0 = arith.constant 0 : i32
    %c0_i32_1 = arith.constant 0 : i32
    return %arg0, %c0_i32, %arg1, %c0_i32_0 : i32, i32, i32, i32
  }
  func.func @transform_2(%arg0: i32, %arg1: i32) -> (i32, i32, i32, i32, i32) {
    %c0_i32 = arith.constant 0 : i32
    %c0_i32_0 = arith.constant 0 : i32
    %c0_i32_1 = arith.constant 0 : i32
    %c0_i32_2 = arith.constant 0 : i32
    return %arg0, %arg1, %c0_i32, %c0_i32_0, %c0_i32_1 : i32, i32, i32, i32, i32
  }
}

</mosaic_0001>

<bundles_post_ra>
// kernel: tpu_custom_call.1
= control target key start
LH: loop header
LB: loop body
LE: loop exit
PB: predicated region body
PF: predicated region fallthrough
CT: control target
= control target key end

     0   :  { %7 = vsyncpa [#allocation3], 0  ;;  %s894_s0 = inlined_call_operand.hbm [shape: f32[2,4,8,128], index: 0, kind: input, shape index: {}]   ;;  %s895_s1 = inlined_call_operand.hbm [shape: f32[2,1,8,128], index: 1, kind: input, shape index: {}]   ;;  %s896_s2 = inlined_call_operand.hbm [shape: f32[2,1,3,8,128], index: 2, kind: output, shape index: {}]  }
   0x1   :  { %9 = vsyncpa [#allocation3 + $0x1], 0 }
   0x2   :  { %10 = vsyncpa [#allocation6], 0 }
   0x3   :  { %12 = vsyncpa [#allocation6 + $0x1], 0 }
   0x4   :  { %13 = vsyncpa [#allocation4], 0 }
   0x5   :  { %15 = vsyncpa [#allocation4 + $0x1], 0  ;;  %s668_s9 = smov 0   ;;  %s670_s10 = smov 0  }
   0x6   :  { %s672_s11 = smov 0   ;;  %s674_s12 = smov 0  }
   0x7   :  { %s676_s13 = smov 0   ;;  %s678_s14 = smov 0  }
   0x8 LB: > { %s394_s15 = sadd.s32 4294967295, %s644_s14   ;;  %s395_s16 = sadd.s32 4294967294, %s644_s14   ;;  %s644_s14 = sphi %s678_s14, %s21_s14   ;;  %s640_s13 = sphi %s676_s13, %s915_s13   ;;  %s636_s12 = sphi %s674_s12, %s914_s12   ;;  %s632_s11 = sphi %s672_s11, %s913_s11   ;;  %s628_s10 = sphi %s670_s10, %s912_s10   ;;  %s624_s9 = sphi %s668_s9, %s911_s9  }
   0x9   : > { %s33_s17 = sadd.s32 1, %s640_s13  ;;  %s42_s18 = sadd.s32 1, %s632_s11 }
   0xa   : > { %p35_p0 = scmp.ge.s32.totalorder %s33_s17, 2  ;;  %p49_p1 = scmp.ne.s32.totalorder %s632_s11, %s628_s10 }
   0xb   : > { %p50_p2 = scmp.eq.s32.totalorder %s644_s14, 0  ;;  %p55_p3 = scmp.ne.s32.totalorder %s628_s10, %s624_s9 }
   0xc   : > { %s917_s17 = smov (%p35_p0, %s33_s17), 0  ;;  %p56_p5 = scmp.eq.s32.totalorder %s394_s15, 0 }
   0xd   : > { %p709_p4 = por %p50_p2, %p49_p1  ;;  %s37_s20 = ssub.s32 %s640_s13, %s917_s17 }
   0xe   : > { %p109_p6 = scmp.eq.s32.totalorder %s394_s15, 1  ;;  %p40_p7 = scmp.eq.s32.totalorder %s37_s20, 0 }
   0xf   : > { %p715_p8 = por %p56_p5, %p55_p3  ;;  %p115_p10 = scmp.eq.s32.totalorder %s395_s16, 1 }
  0x10   : > { %p719_p9 = por %p109_p6, %p49_p1  ;;  %p434_p13 = scmp.lt.s32.totalorder %s644_s14, 2 }
  0x11   : > { %s900_s21 = scalar_select %p715_p8, 1, 0 }
  0x12   : > { %s901_s22 = scalar_select %p719_p9, 1, 0 }
  0x13   : > { %s724_s23 = scalar_select %p40_p7, %s632_s11, %s42_s18  }
  0x14   : > { %p726_p11 = por %p115_p10, %p55_p3  ;;  %s733_s25 = sand.u32 1, %s632_s11  }
  0x15   : > { %s398_s26 = sshll.u32 %s733_s25, 5  ;;  %s414_s27 = sshll.u32 %s640_s13, 9 }
  0x16   : > { %s902_s24 = scalar_select %p726_p11, 1, 0 }
  0x17   : > { %s740_s30 = scalar_lea.hbm %s894_s0, %s414_s27  ;;  %s139_s3 = scalar_lea.vmem [#allocation2], %s398_s26 }
  0x18   : > { %s147_s4 = sshll.u32 %s139_s3, 4  ;;  %p746_p0 = pnand %p434_p13, %p709_p4  ;;  %s742_s4 = int_to_ptr.vmem [resolvable:$true] %s147_s4 }
  0x19   : > { %s136_s6 = scalar_lea.sflag [#allocation3], %s733_s25  ;;  %s498_s7 = scalar_lea.hbm %s740_s30, 512 }
  0x1a   : > { %p499_p2 = scmp.ne.s32.totalorder %s740_s30, %s498_s7  ;;  %p500_p3 = pneg %p746_p0 }
  0x1b   : > { %s503_s16 = scalar_lea.hbm %s894_s0, 1024  ;;  %p504_p4 = scmp.lt.u32.totalorder %s740_s30, %s894_s0 }
  0x1c   : > { %p501_p5 = pnand %p500_p3, %p499_p2  ;;  %p505_p7 = scmp.lt.u32.totalorder %s503_s16, %s498_s7 }
  0x1d   : > { %p507_p13 = scmp.lt.u32.totalorder %s498_s7, %s740_s30 }
  0x1e   : > { %p502_p6 = pneg %p501_p5  ;;  %p506_p10 = por %p505_p7, %p504_p4 }
  0x20   : > { %p508_p12 = por %p507_p13, %p506_p10 }
  0x22   : > { %p509_p1 = pnand %p508_p12, %p502_p6 }
  0x24   : > { %512 = shalt.err (!%p509_p1)
}
  0x25   : > { %s513_s20 = scalar_lea.vmem %s742_s4, 512  ;;  %s646_s26 = smov [#allocation2]  }
  0x26   : > { %p514_p2 = scmp.ne.s32.totalorder %s742_s4, %s513_s20  ;;  %s518_s27 = sshll.u32 %s646_s26, 4  ;;  %s519_s27 = int_to_ptr.vmem [resolvable:$false] %s518_s27 }
  0x27   : > { %s520_s28 = scalar_lea.vmem %s519_s27, 1024  ;;  %p521_p9 = scmp.lt.s32.totalorder %s742_s4, %s519_s27 }
  0x28   : > { %p516_p5 = pnand %p514_p2, %p500_p3  ;;  %p522_p4 = scmp.lt.s32.totalorder %s520_s28, %s513_s20 }
  0x2a   : > { %p517_p11 = pneg %p516_p5  ;;  %p523_p7 = por %p522_p4, %p521_p9 }
  0x2c   : > { %p524_p10 = pnand %p523_p7, %p517_p11 }
  0x2e   : > { %527 = shalt.err (!%p524_p10)
}
  0x2f   : > { %s647_s29 = smov 128   ;;  %s648_s3 = smov 8  }
  0x30   : > { %426 = dma.hbm_to_vmem [thread:$0]  (!%p746_p0), %s740_s30, 512, %s742_s4, %s136_s6, %s647_s29, %s647_s29, %s648_s3  }
  0x31   : > { %p174_p12 = scmp.lt.s32.totalorder %s644_s14, 3  ;;  %s401_s7 = sshll.u32 %s733_s25, 3 }
  0x32   : > { %s402_s8 = sshll.u32 %s640_s13, 7  ;;  %p904_p9 = scmp.ge.s32.totalorder %s644_s14, 1 }
  0x33   : > { %s791_s19 = scalar_lea.hbm %s895_s1, %s402_s8  ;;  %s161_s20 = scalar_lea.vmem [#allocation5], %s401_s7 }
  0x34   : > { %p784_p11 = pnand %p904_p9, %p174_p12  ;;  %s169_s26 = sshll.u32 %s161_s20, 4  ;;  %s170_s26 = int_to_ptr.vmem [resolvable:$true] %s169_s26 }
  0x35   : > { %s158_s30 = scalar_lea.sflag [#allocation6], %s733_s25  ;;  %s528_s4 = scalar_lea.hbm %s791_s19, 128 }
  0x36   : > { %s905_s15 = scalar_select %p784_p11, 1, 0 }
  0x37   : > { %p529_p1 = scmp.ne.s32.totalorder %s791_s19, %s528_s4  ;;  %s533_s28 = scalar_lea.hbm %s895_s1, 256 }
  0x38   : > { %p534_p2 = scmp.lt.u32.totalorder %s791_s19, %s895_s1  ;;  %p535_p5 = scmp.lt.u32.totalorder %s533_s28, %s528_s4 }
  0x39   : > { %p531_p6 = pnand %p529_p1, %p500_p3  ;;  %p537_p7 = scmp.lt.u32.totalorder %s528_s4, %s791_s19 }
  0x3a   : > { %p536_p4 = por %p535_p5, %p534_p2 }
  0x3b   : > { %p532_p13 = pneg %p531_p6 }
  0x3c   : > { %p538_p10 = por %p537_p7, %p536_p4 }
  0x3e   : > { %p539_p12 = pnand %p538_p10, %p532_p13 }
  0x40   : > { %542 = shalt.err (!%p539_p12)
}
  0x41   : > { %s543_s25 = scalar_lea.vmem %s170_s26, 128  ;;  %s649_s7 = smov [#allocation5]  }
  0x42   : > { %p544_p9 = scmp.ne.s32.totalorder %s170_s26, %s543_s25  ;;  %s548_s8 = sshll.u32 %s649_s7, 4  ;;  %s549_s8 = int_to_ptr.vmem [resolvable:$false] %s548_s8 }
  0x43   : > { %s550_s16 = scalar_lea.vmem %s549_s8, 256  ;;  %p551_p8 = scmp.lt.s32.totalorder %s170_s26, %s549_s8 }
  0x44   : > { %p546_p1 = pnand %p544_p9, %p500_p3  ;;  %p552_p11 = scmp.lt.s32.totalorder %s550_s16, %s543_s25 }
  0x46   : > { %p547_p6 = pneg %p546_p1  ;;  %p553_p2 = por %p552_p11, %p551_p8 }
  0x48   : > { %p554_p5 = pnand %p553_p2, %p547_p6 }
  0x4a   : > { %557 = shalt.err (!%p554_p5)
}
  0x4b   : > { %429 = dma.hbm_to_vmem [thread:$0]  (!%p746_p0), %s791_s19, 128, %s170_s26, %s158_s30  }
  0x4c   : > { %p906_p13 = scmp.ne.s32.totalorder %s905_s15, 0 }
  0x4d   : > { %s816_s18 = sand.u32 (!%p906_p13), 1, %s628_s10   ;;  %p907_p3 = scmp.ne.s32.totalorder (!%p906_p13), %s900_s21, 0 }
  0x4e   : > { %178 = sbr.rel (%p906_p13) target bundleno = 149 (0x95), region = 28  ;;  %s404_s20 = sshll.u32 (!%p906_p13), %s816_s18, 5 }
  0x4f   : > { %s181_s4 = scalar_lea.sflag (!%p906_p13), [#allocation3], %s816_s18  ;;  %s184_s6 = scalar_lea.vmem (!%p906_p13), [#allocation2], %s404_s20 }
  0x55   : > { %611 = dma.done.wait (%p907_p3), %s181_s4, 512  }
  0x56   : > { %613 = vsyncadd (%p907_p3), %s181_s4, 4294966784  ;;  %s405_s5 = sshll.u32 %s816_s18, 3  ;;  %s190_s15 = scalar_lea.sflag [#allocation6], %s816_s18 }
  0x57   : > { %s193_s19 = scalar_lea.vmem [#allocation5], %s405_s5 }
  0x58   : > { %615 = dma.done.wait (%p907_p3), %s190_s15, 128  }
  0x59   : > { %617 = vsyncadd (%p907_p3), %s190_s15, 4294967168  ;;  %v249_v0 = vlaneseq  ;;  %s415_s26 = smul.u32 24, %s816_s18  ;;  %v219_v5 = vld [vmem:[%s184_s6] sm:$0xff]  ;;  %v406_v6 = vld [vmem:[%s184_s6 + $0x8] sm:$0xff]  ;;  %s269_s25 = scalar_lea.sflag [#allocation4], %s816_s18 }
  0x5a   : > { %v407_v7 = vld [vmem:[%s184_s6 + $0x10] sm:$0xff]  ;;  %v226_v8 = vld [vmem:[%s193_s19] sm:$0xff]  ;;  %v227_v9 = vmax.f32 %v219_v5, %v406_v6  ;;  %v408_v10 = vld [vmem:[%s184_s6 + $0x18] sm:$0xff]  ;;  %s416_s21 = smul.u32 384, %s636_s12  ;;  %p908_p0 = scmp.ne.s32.totalorder %s901_s22, 0 }
  0x5b   : > { %v250_v1 = vshrl.u32 %v249_v0, 7  ;;  %v252_v2 = vand.u32 127, %v249_v0  ;;  %s832_s30 = scalar_lea.vmem [#allocation7], %s415_s26  ;;  %s650_s12 = smov [#allocation7]  }
  0x5c   : > { %v228_v12 = vmax.f32 %v227_v9, %v407_v7  ;;  %s284_s27 = sshll.u32 %s832_s30, 4  ;;  %s844_s3 = scalar_lea.hbm %s896_s2, %s416_s21  ;;  %s838_s27 = int_to_ptr.vmem [resolvable:$true] %s284_s27 }
  0x5d   : > { %v253_v3 = vmul.u32 128, %v250_v1  ;;  %s558_s7 = scalar_lea.vmem %s838_s27, 384  ;;  %s562_s8 = sshll.u32 %s650_s12, 4  ;;  %s563_s8 = int_to_ptr.vmem [resolvable:$false] %s562_s8 }
  0x5e   : > { %v229_v13 = vmax.f32 %v228_v12, %v408_v10  ;;  %p559_p8 = scmp.ne.s32.totalorder %s838_s27, %s558_s7  ;;  %s564_s16 = scalar_lea.vmem %s563_s8, 768 }
  0x5f   : > { %v254_v4 = vadd.s32 %v253_v3, %v252_v2  ;;  %p565_p7 = scmp.lt.s32.totalorder %s838_s27, %s563_s8  ;;  %p566_p10 = scmp.lt.s32.totalorder %s564_s16, %s558_s7 }
  0x60   : > { %v230_v14 = vsub.f32 %v219_v5, %v229_v13  ;;  %v233_v15 = vsub.f32 %v406_v6, %v229_v13  ;;  %v237_v16 = vsub.f32 %v407_v7, %v229_v13  ;;  %v241_v17 = vsub.f32 %v408_v10, %v229_v13  ;;  %p560_p11 = pnand %p559_p8, %p908_p0 }
  0x61   : > { %vm256_vm0 = vcmp.lt.s32.totalorder %v254_v4, 256  ;;  %p567_p12 = por %p566_p10, %p565_p7 }
  0x62   : > { %v258_v11 = vsel %vm256_vm0, %v226_v8, 0.0  ;;  %v231_v18 = vmul.f32 1.442695, %v230_v14  ;;  %v234_v19 = vmul.f32 1.442695, %v233_v15  ;;  %p561_p4 = pneg %p560_p11 }
  0x63   : > { %410 = vst [vmem:[%s832_s30 + $0x10] sm:$0xff] %v258_v11  ;;  %v238_v20 = vmul.f32 1.442695, %v237_v16  ;;  %v242_v21 = vmul.f32 1.442695, %v241_v17 }
  0x64   : > { %488 = vpow2.f32 %v231_v18  ;;  %p568_p9 = pnand %p567_p12, %p561_p4 }
  0x65   : > { %490 = vpow2.f32 %v234_v19 }
  0x66   : > { %492 = vpow2.f32 %v238_v20 }
  0x67   : > { %494 = vpow2.f32 %v242_v21 }
  0x6e   : > { %v489_v22 = vpop.eup %488 }
  0x6f   : > { %v491_v23 = vpop.eup %490 }
  0x70   : > { %v493_v24 = vpop.eup %492  ;;  %v236_v25 = vadd.f32 %v491_v23, %v489_v22 }
  0x71   : > { %v495_v26 = vpop.eup %494 }
  0x72   : > { %v240_v27 = vadd.f32 %v493_v24, %v236_v25 }
  0x74   : > { %v244_v28 = vadd.f32 %v495_v26, %v240_v27 }
  0x76   : > { %496 = vrcp.f32 %v244_v28 }
  0x80   : > { %v497_v29 = vpop.eup %496 }
  0x81   : > { %v246_v30 = vmul.f32 %v497_v29, %v491_v23 }
  0x83   : > { %v257_v31 = vsel %vm256_vm0, %v246_v30, 0.0 }
  0x84   : > { %v259_v32 = vmul.f32 %v258_v11, %v257_v31  ;;  %409 = vst [vmem:[%s832_s30 + $0x8] sm:$0xff] %v257_v31 }
  0x86   : > { %261 = vst [vmem:[%s832_s30] sm:$0xff] %v259_v32 }
  0x87   : > { %571 = shalt.err (!%p568_p9)
}
  0x88   : > { %s572_s20 = scalar_lea.hbm %s844_s3, 384  ;;  %s576_s5 = scalar_lea.hbm %s896_s2, 768 }
  0x89   : > { %p573_p1 = scmp.ne.s32.totalorder %s844_s3, %s572_s20  ;;  %p577_p5 = scmp.lt.u32.totalorder %s844_s3, %s896_s2 }
  0x8a   : > { %p578_p13 = scmp.lt.u32.totalorder %s576_s5, %s572_s20  ;;  %p580_p8 = scmp.lt.u32.totalorder %s572_s20, %s844_s3 }
  0x8b   : > { %p574_p6 = pnand %p573_p1, %p908_p0 }
  0x8c   : > { %p579_p3 = por %p578_p13, %p577_p5 }
  0x8d   : > { %p575_p2 = pneg %p574_p6 }
  0x8e   : > { %p581_p11 = por %p580_p8, %p579_p3 }
  0x90   : > { %p582_p4 = pnand %p581_p11, %p575_p2 }
  0x92   : > { %585 = shalt.err (!%p582_p4)
}
  0x93   : > { %s651_s26 = smov 128   ;;  %s652_s30 = smov 8  }
  0x94   : > { %421 = dma.vmem_to_hbm [thread:$0]  (%p908_p0), %s838_s27, 384, %s844_s3, %s269_s25, %s651_s26, %s651_s26, %s652_s30  }
  0x95 PF: > { %s299_s21 = sand.u32 1, %s624_s9   ;;  %p909_p7 = scmp.ne.s32.totalorder %s902_s24, 0 }
  0x96   : > { %p910_p10 = scmp.ge.s32.totalorder %s644_s14, 2  ;;  %s300_s28 = scalar_lea.sflag [#allocation4], %s299_s21 }
  0x98   : > { %p431_p12 = pnand %p910_p10, %p909_p7 }
  0x9a   : > { %619 = dma.done.wait (!%p431_p12), %s300_s28, 384  }
  0x9b   : > { %621 = vsyncadd (!%p431_p12), %s300_s28, 4294966912  ;;  %s21_s14 = sadd.s32 1, %s644_s14   ;;  %s911_s9 = smov %s628_s10 }
  0x9c   : > { %p18_p9 = scmp.ge.s32.totalorder %s21_s14, 4   ;;  %s912_s10 = smov %s632_s11 }
  0x9d   : > { %s913_s11 = smov %s724_s23  ;;  %s914_s12 = smov %s640_s13 }
  0x9e   : > { %s915_s13 = smov %s917_s17  ;;  %20 = sbr.rel (!%p18_p9) target bundleno = 8 (0x8), region = 91 }
  0xa5   :  { %305 = vsyncpa [#allocation3], 1 }
  0xa6   :  { %307 = vsyncpa [#allocation3 + $0x1], 1 }
  0xa7   :  { %308 = vsyncpa [#allocation6], 1 }
  0xa8   :  { %310 = vsyncpa [#allocation6 + $0x1], 1 }
  0xa9   :  { %311 = vsyncpa [#allocation4], 1 }
  0xaa   :  { %313 = vsyncpa [#allocation4 + $0x1], 1 }

</bundles_post_ra>
